<compile_context>
chip_gen: v7x
topology: tpu7x:2x2x1
jax: 0.10.0
libtpu: 0.0.40
codegen_flags: <defaults>
</compile_context>

<pallas_src>
import functools

import jax
import jax.numpy as jnp
from jax.experimental import pallas as pl
from jax.experimental.pallas import tpu as pltpu


def _edge_enhancer_kernel(x_ref, top_ref, bot_ref, w_ref, shift_ref, o_ref):
    # x_ref   : (1, C, TH, W)  body rows of this row-tile (NCHW layout)
    # top_ref : (1, C, HB, W)  block containing the row just above the tile
    # bot_ref : (1, C, HB, W)  block containing the row just below the tile
    # w_ref   : (C, C)  SMEM   1x1 conv weight with BN scale folded in (row = out ch)
    # shift_ref: (C,)   SMEM   folded BN shift
    # o_ref   : (1, C, TH, W)
    t = pl.program_id(1)
    n_t = pl.num_programs(1)

    x = x_ref[0].astype(jnp.float32)                       # (C, TH, W)
    C, TH, W = x.shape
    HB = top_ref.shape[2]

    # Halo rows; zero them at the image border (matches AvgPool2d zero padding).
    not_first = (t > 0).astype(jnp.float32)
    not_last = (t < n_t - 1).astype(jnp.float32)
    top = top_ref[0].astype(jnp.float32)[:, HB - 1:HB, :] * not_first   # (C, 1, W)
    bot = bot_ref[0].astype(jnp.float32)[:, 0:1, :] * not_last          # (C, 1, W)

    xh = jnp.concatenate([top, x, bot], axis=1)            # (C, TH+2, W)

    # Separable 3x3 box sum, stride 1, zero padding, fixed divisor 9.
    xp = jnp.pad(xh, ((0, 0), (0, 0), (1, 1)))             # pad W (lane axis) only
    hsum = xp[:, :, 0:W] + xp[:, :, 1:W + 1] + xp[:, :, 2:W + 2]        # (C, TH+2, W)
    box = hsum[:, 0:TH, :] + hsum[:, 1:TH + 1, :] + hsum[:, 2:TH + 2, :]  # (C, TH, W)
    edge = x - box * (1.0 / 9.0)

    # 1x1 conv (BN scale pre-folded) + shift + sigmoid + residual, all on the VPU.
    # Scalar weights are read from SMEM; unrolled C*C MACs is the right trade
    # for small C (avoids a near-empty MXU pass + relayout).  For C >= ~128
    # replace with an MXU matmul on a (C, TH*W) view.
    for co in range(C):
        acc = w_ref[co, 0] * edge[0]
        for ci in range(1, C):
            acc = acc + w_ref[co, ci] * edge[ci]
        y = jax.nn.sigmoid(acc + shift_ref[co])
        o_ref[0, co] = (x[co] + y).astype(o_ref.dtype)


def _pick_row_tile(C, H, W, itemsize, budget_bytes=2 << 20):
    """Largest multiple-of-8 divisor of H whose (C, TH, W) block stays in budget."""
    if H % 8 != 0:
        return H
    max_rows = max(8, budget_bytes // max(1, C * W * itemsize))
    th = 8
    for cand in range(8, H + 1, 8):
        if H % cand == 0 and cand <= max_rows:
            th = cand
    return th


def edge_enhancer(x_nchw, conv_w, gamma, beta, run_mean, run_var,
                  eps=1e-5, row_tile=None):
    """x_nchw: (N, C, H, W); conv_w: (C_out, C_in, 1, 1) PyTorch layout."""
    N, C, H, W = x_nchw.shape

    # Fold BatchNorm (eval) into the bias-free 1x1 conv:
    #   scale = gamma / sqrt(var + eps); w' = scale[:, None] * w; shift = beta - mean*scale
    scale = (gamma / jnp.sqrt(run_var + eps)).astype(jnp.float32)
    shift = (beta - run_mean * scale).astype(jnp.float32)
    w = conv_w[:, :, 0, 0].astype(jnp.float32)            # (C_out, C_in)
    w_scaled = w * scale[:, None]

    if row_tile is None:
        row_tile = _pick_row_tile(C, H, W, jnp.dtype(x_nchw.dtype).itemsize)
    th = row_tile
    assert H % th == 0, "row_tile must divide H"
    if th == H:
        hb = 8 if H % 8 == 0 else H                        # halo block height
    else:
        assert th % 8 == 0, "row_tile must be a multiple of 8 when tiling"
        hb = 8
    n_row_tiles = H // th
    thb = th // hb                                         # halo blocks per row-tile
    hblk = H // hb                                         # halo blocks along H

    out = pl.pallas_call(
        _edge_enhancer_kernel,
        out_shape=jax.ShapeDtypeStruct((N, C, H, W), x_nchw.dtype),
        grid_spec=pltpu.PrefetchScalarGridSpec(
            num_scalar_prefetch=0,
            grid=(N, n_row_tiles),
            in_specs=[
                # Body rows of this tile.
                pl.BlockSpec((1, C, th, W), lambda n, t: (n, 0, t, 0)),
                # 8-row block holding the row above the tile (clamped at top).
                pl.BlockSpec((1, C, hb, W),
                             lambda n, t: (n, 0, jnp.maximum(t * thb - 1, 0), 0)),
                # 8-row block holding the row below the tile (clamped at bottom).
                pl.BlockSpec((1, C, hb, W),
                             lambda n, t: (n, 0, jnp.minimum((t + 1) * thb, hblk - 1), 0)),
                # Folded conv weight and BN shift live in SMEM (scalar reads).
                pl.BlockSpec(memory_space=pltpu.MemorySpace.SMEM),
                pl.BlockSpec(memory_space=pltpu.MemorySpace.SMEM),
            ],
            out_specs=pl.BlockSpec((1, C, th, W), lambda n, t: (n, 0, t, 0)),
        ),
        compiler_params=pltpu.CompilerParams(
            dimension_semantics=("parallel", "parallel")),
    )(x_nchw, x_nchw, x_nchw, w_scaled, shift)
    return out


def edge_enhancer_reference(x, conv_w, gamma, beta, run_mean, run_var, eps=1e-5):
    """Pure-JAX reference (NCHW), mirrors the PyTorch forward."""
    pooled = jax.lax.reduce_window(
        x, 0.0, jax.lax.add, (1, 1, 3, 3), (1, 1, 1, 1),
        padding=((0, 0), (0, 0), (1, 1), (1, 1))) / 9.0
    edge = x - pooled
    y = jnp.einsum('nchw,oc->nohw', edge, conv_w[:, :, 0, 0])
    scale = gamma / jnp.sqrt(run_var + eps)
    shift = beta - run_mean * scale
    y = y * scale[None, :, None, None] + shift[None, :, None, None]
    y = jax.nn.sigmoid(y)
    return x + y


if __name__ == "__main__":
    key = jax.random.PRNGKey(0)
    k1, k2, k3, k4, k5, k6 = jax.random.split(key, 6)

    N, C, H, W = 2, 4, 16, 16
    x = jax.random.normal(k1, (N, C, H, W), dtype=jnp.float32)

    # Deterministic synthetic parameters (shapes from the module __init__).
    conv_w = jax.random.normal(k2, (C, C, 1, 1), dtype=jnp.float32) * 0.5   # Conv2d(C, C, 1, bias=False)
    gamma = jax.random.uniform(k3, (C,), minval=0.5, maxval=1.5, dtype=jnp.float32)   # BN weight
    beta = jax.random.normal(k4, (C,), dtype=jnp.float32) * 0.1                        # BN bias
    run_mean = jax.random.normal(k5, (C,), dtype=jnp.float32) * 0.1                    # BN running_mean
    run_var = jax.random.uniform(k6, (C,), minval=0.5, maxval=1.5, dtype=jnp.float32)  # BN running_var

    ref = edge_enhancer_reference(x, conv_w, gamma, beta, run_mean, run_var)

    # Row-tiled path (2 row tiles of 8 rows, exercises the halo handling).
    out = edge_enhancer(x, conv_w, gamma, beta, run_mean, run_var, row_tile=8)
    out = jax.block_until_ready(out)
    assert out.shape == (N, C, H, W)
    assert jnp.max(jnp.abs(out - ref)) < 1e-4, "mismatch vs reference (tiled path)"

    # Auto-picked tile (single tile for this tiny image).
    out2 = jax.block_until_ready(
        edge_enhancer(x, conv_w, gamma, beta, run_mean, run_var))
    assert jnp.max(jnp.abs(out2 - ref)) < 1e-4, "mismatch vs reference (auto path)"

    print("KERNEL_OK")
</pallas_src>

<mosaic_0001>
module attributes {stable_mosaic.version = 11 : i64} {
  func.func @_edge_enhancer_kernel(%arg0: i32, %arg1: i32, %arg2: memref<1x4x8x16xf32, #tpu.memory_space<vmem>>, %arg3: memref<1x4x8x16xf32, #tpu.memory_space<vmem>>, %arg4: memref<1x4x8x16xf32, #tpu.memory_space<vmem>>, %arg5: memref<4x4xf32, #tpu.memory_space<smem>>, %arg6: memref<4xf32, #tpu.memory_space<smem>>, %arg7: memref<1x4x8x16xf32, #tpu.memory_space<vmem>>) attributes {dimension_semantics = [#tpu.dimension_semantics<parallel>, #tpu.dimension_semantics<parallel>], iteration_bounds = array<i64: 2, 2>, scalar_prefetch = 0 : i64, scratch_operands = 0 : i64, tpu.core_type = #tpu.core_type<tc>, window_params = [{transform_indices = @transform_0, window_bounds = array<i64: 1, 4, 8, 16>}, {transform_indices = @transform_1, window_bounds = array<i64: 1, 4, 8, 16>}, {transform_indices = @transform_2, window_bounds = array<i64: 1, 4, 8, 16>}, {transform_indices = @transform_3, window_bounds = array<i64: 4, 4>}, {transform_indices = @transform_4, window_bounds = array<i64: 4>}, {transform_indices = @transform_5, window_bounds = array<i64: 1, 4, 8, 16>}]} {
    %c0 = arith.constant 0 : index
    %c0_0 = arith.constant 0 : index
    %c0_1 = arith.constant 0 : index
    %c0_2 = arith.constant 0 : index
    %0 = vector.load %arg2[%c0, %c0_0, %c0_1, %c0_2] : memref<1x4x8x16xf32, #tpu.memory_space<vmem>>, vector<1x4x8x16xf32>
    %1 = vector.shape_cast %0 : vector<1x4x8x16xf32> to vector<4x8x16xf32>
    %c0_i32 = arith.constant 0 : i32
    %2 = arith.cmpi sgt, %arg1, %c0_i32 : i32
    %3 = arith.extui %2 : i1 to i32
    %4 = arith.sitofp %3 : i32 to f32
    %c1_i32 = arith.constant 1 : i32
    %5 = arith.cmpi slt, %arg1, %c1_i32 : i32
    %6 = arith.extui %5 : i1 to i32
    %7 = arith.sitofp %6 : i32 to f32
    %c0_3 = arith.constant 0 : index
    %c0_4 = arith.constant 0 : index
    %c0_5 = arith.constant 0 : index
    %c0_6 = arith.constant 0 : index
    %8 = vector.load %arg3[%c0_3, %c0_4, %c0_5, %c0_6] : memref<1x4x8x16xf32, #tpu.memory_space<vmem>>, vector<1x4x8x16xf32>
    %9 = vector.shape_cast %8 : vector<1x4x8x16xf32> to vector<4x8x16xf32>
    %10 = vector.extract_strided_slice %9 {offsets = [0, 7, 0], sizes = [4, 1, 16], strides = [1, 1, 1]} : vector<4x8x16xf32> to vector<4x1x16xf32>
    %11 = vector.broadcast %4 : f32 to vector<4x1x16xf32>
    %12 = arith.mulf %10, %11 : vector<4x1x16xf32>
    %c0_7 = arith.constant 0 : index
    %c0_8 = arith.constant 0 : index
    %c0_9 = arith.constant 0 : index
    %c0_10 = arith.constant 0 : index
    %13 = vector.load %arg4[%c0_7, %c0_8, %c0_9, %c0_10] : memref<1x4x8x16xf32, #tpu.memory_space<vmem>>, vector<1x4x8x16xf32>
    %14 = vector.shape_cast %13 : vector<1x4x8x16xf32> to vector<4x8x16xf32>
    %15 = vector.extract_strided_slice %14 {offsets = [0, 0, 0], sizes = [4, 1, 16], strides = [1, 1, 1]} : vector<4x8x16xf32> to vector<4x1x16xf32>
    %16 = vector.broadcast %7 : f32 to vector<4x1x16xf32>
    %17 = arith.mulf %15, %16 : vector<4x1x16xf32>
    %18 = tpu.concatenate %12, %1, %17 in 1 : vector<4x1x16xf32>, vector<4x8x16xf32>, vector<4x1x16xf32> -> vector<4x10x16xf32>
    %c0_i32_11 = arith.constant 0 : i32
    %19 = arith.sitofp %c0_i32_11 : i32 to f32
    %20 = vector.broadcast %19 : f32 to vector<4x10x1xf32>
    %21 = tpu.concatenate %20, %18 in 2 : vector<4x10x1xf32>, vector<4x10x16xf32> -> vector<4x10x17xf32>
    %22 = vector.broadcast %19 : f32 to vector<4x10x1xf32>
    %23 = tpu.concatenate %21, %22 in 2 : vector<4x10x17xf32>, vector<4x10x1xf32> -> vector<4x10x18xf32>
    %24 = vector.extract_strided_slice %23 {offsets = [0, 0, 0], sizes = [4, 10, 16], strides = [1, 1, 1]} : vector<4x10x18xf32> to vector<4x10x16xf32>
    %25 = vector.extract_strided_slice %23 {offsets = [0, 0, 1], sizes = [4, 10, 16], strides = [1, 1, 1]} : vector<4x10x18xf32> to vector<4x10x16xf32>
    %26 = arith.addf %24, %25 : vector<4x10x16xf32>
    %27 = vector.extract_strided_slice %23 {offsets = [0, 0, 2], sizes = [4, 10, 16], strides = [1, 1, 1]} : vector<4x10x18xf32> to vector<4x10x16xf32>
    %28 = arith.addf %26, %27 : vector<4x10x16xf32>
    %29 = vector.extract_strided_slice %28 {offsets = [0, 0, 0], sizes = [4, 8, 16], strides = [1, 1, 1]} : vector<4x10x16xf32> to vector<4x8x16xf32>
    %30 = vector.extract_strided_slice %28 {offsets = [0, 1, 0], sizes = [4, 8, 16], strides = [1, 1, 1]} : vector<4x10x16xf32> to vector<4x8x16xf32>
    %31 = arith.addf %29, %30 : vector<4x8x16xf32>
    %32 = vector.extract_strided_slice %28 {offsets = [0, 2, 0], sizes = [4, 8, 16], strides = [1, 1, 1]} : vector<4x10x16xf32> to vector<4x8x16xf32>
    %33 = arith.addf %31, %32 : vector<4x8x16xf32>
    %cst = arith.constant 0.111111112 : f32
    %34 = vector.broadcast %cst : f32 to vector<4x8x16xf32>
    %35 = arith.mulf %33, %34 : vector<4x8x16xf32>
    %36 = arith.subf %1, %35 : vector<4x8x16xf32>
    %c0_12 = arith.constant 0 : index
    %c0_13 = arith.constant 0 : index
    %37 = memref.load %arg5[%c0_12, %c0_13] : memref<4x4xf32, #tpu.memory_space<smem>>
    %38 = vector.extract_strided_slice %36 {offsets = [0, 0, 0], sizes = [1, 8, 16], strides = [1, 1, 1]} : vector<4x8x16xf32> to vector<1x8x16xf32>
    %39 = vector.shape_cast %38 : vector<1x8x16xf32> to vector<8x16xf32>
    %40 = vector.broadcast %37 : f32 to vector<8x16xf32>
    %41 = arith.mulf %40, %39 : vector<8x16xf32>
    %c0_14 = arith.constant 0 : index
    %c1 = arith.constant 1 : index
    %42 = memref.load %arg5[%c0_14, %c1] : memref<4x4xf32, #tpu.memory_space<smem>>
    %43 = vector.extract_strided_slice %36 {offsets = [1, 0, 0], sizes = [1, 8, 16], strides = [1, 1, 1]} : vector<4x8x16xf32> to vector<1x8x16xf32>
    %44 = vector.shape_cast %43 : vector<1x8x16xf32> to vector<8x16xf32>
    %45 = vector.broadcast %42 : f32 to vector<8x16xf32>
    %46 = arith.mulf %45, %44 : vector<8x16xf32>
    %47 = arith.addf %41, %46 : vector<8x16xf32>
    %c0_15 = arith.constant 0 : index
    %c2 = arith.constant 2 : index
    %48 = memref.load %arg5[%c0_15, %c2] : memref<4x4xf32, #tpu.memory_space<smem>>
    %49 = vector.extract_strided_slice %36 {offsets = [2, 0, 0], sizes = [1, 8, 16], strides = [1, 1, 1]} : vector<4x8x16xf32> to vector<1x8x16xf32>
    %50 = vector.shape_cast %49 : vector<1x8x16xf32> to vector<8x16xf32>
    %51 = vector.broadcast %48 : f32 to vector<8x16xf32>
    %52 = arith.mulf %51, %50 : vector<8x16xf32>
    %53 = arith.addf %47, %52 : vector<8x16xf32>
    %c0_16 = arith.constant 0 : index
    %c3 = arith.constant 3 : index
    %54 = memref.load %arg5[%c0_16, %c3] : memref<4x4xf32, #tpu.memory_space<smem>>
    %55 = vector.extract_strided_slice %36 {offsets = [3, 0, 0], sizes = [1, 8, 16], strides = [1, 1, 1]} : vector<4x8x16xf32> to vector<1x8x16xf32>
    %56 = vector.shape_cast %55 : vector<1x8x16xf32> to vector<8x16xf32>
    %57 = vector.broadcast %54 : f32 to vector<8x16xf32>
    %58 = arith.mulf %57, %56 : vector<8x16xf32>
    %59 = arith.addf %53, %58 : vector<8x16xf32>
    %c0_17 = arith.constant 0 : index
    %60 = memref.load %arg6[%c0_17] : memref<4xf32, #tpu.memory_space<smem>>
    %61 = vector.broadcast %60 : f32 to vector<8x16xf32>
    %62 = arith.addf %59, %61 : vector<8x16xf32>
    %63 = arith.negf %62 : vector<8x16xf32>
    %64 = math.exp %63 : vector<8x16xf32>
    %cst_18 = arith.constant 1.000000e+00 : f32
    %65 = vector.broadcast %cst_18 : f32 to vector<8x16xf32>
    %66 = arith.addf %65, %64 : vector<8x16xf32>
    %67 = arith.divf %65, %66 : vector<8x16xf32>
    %68 = vector.extract_strided_slice %1 {offsets = [0, 0, 0], sizes = [1, 8, 16], strides = [1, 1, 1]} : vector<4x8x16xf32> to vector<1x8x16xf32>
    %69 = vector.shape_cast %68 : vector<1x8x16xf32> to vector<8x16xf32>
    %70 = arith.addf %69, %67 : vector<8x16xf32>
    %c0_19 = arith.constant 0 : index
    %c0_20 = arith.constant 0 : index
    %c0_21 = arith.constant 0 : index
    %c0_22 = arith.constant 0 : index
    %71 = vector.load %arg7[%c0_19, %c0_20, %c0_21, %c0_22] : memref<1x4x8x16xf32, #tpu.memory_space<vmem>>, vector<1x1x8x16xf32>
    %72 = vector.shape_cast %71 : vector<1x1x8x16xf32> to vector<8x16xf32>
    %73 = vector.shape_cast %70 : vector<8x16xf32> to vector<1x1x8x16xf32>
    tpu.vector_store %arg7[%c0_19, %c0_20, %c0_21, %c0_22], %73 {strides = array<i32>} : memref<1x4x8x16xf32, #tpu.memory_space<vmem>>, vector<1x1x8x16xf32>,
    %c1_23 = arith.constant 1 : index
    %c0_24 = arith.constant 0 : index
    %74 = memref.load %arg5[%c1_23, %c0_24] : memref<4x4xf32, #tpu.memory_space<smem>>
    %75 = vector.extract_strided_slice %36 {offsets = [0, 0, 0], sizes = [1, 8, 16], strides = [1, 1, 1]} : vector<4x8x16xf32> to vector<1x8x16xf32>
    %76 = vector.shape_cast %75 : vector<1x8x16xf32> to vector<8x16xf32>
    %77 = vector.broadcast %74 : f32 to vector<8x16xf32>
    %78 = arith.mulf %77, %76 : vector<8x16xf32>
    %c1_25 = arith.constant 1 : index
    %c1_26 = arith.constant 1 : index
    %79 = memref.load %arg5[%c1_25, %c1_26] : memref<4x4xf32, #tpu.memory_space<smem>>
    %80 = vector.extract_strided_slice %36 {offsets = [1, 0, 0], sizes = [1, 8, 16], strides = [1, 1, 1]} : vector<4x8x16xf32> to vector<1x8x16xf32>
    %81 = vector.shape_cast %80 : vector<1x8x16xf32> to vector<8x16xf32>
    %82 = vector.broadcast %79 : f32 to vector<8x16xf32>
    %83 = arith.mulf %82, %81 : vector<8x16xf32>
    %84 = arith.addf %78, %83 : vector<8x16xf32>
    %c1_27 = arith.constant 1 : index
    %c2_28 = arith.constant 2 : index
    %85 = memref.load %arg5[%c1_27, %c2_28] : memref<4x4xf32, #tpu.memory_space<smem>>
    %86 = vector.extract_strided_slice %36 {offsets = [2, 0, 0], sizes = [1, 8, 16], strides = [1, 1, 1]} : vector<4x8x16xf32> to vector<1x8x16xf32>
    %87 = vector.shape_cast %86 : vector<1x8x16xf32> to vector<8x16xf32>
    %88 = vector.broadcast %85 : f32 to vector<8x16xf32>
    %89 = arith.mulf %88, %87 : vector<8x16xf32>
    %90 = arith.addf %84, %89 : vector<8x16xf32>
    %c1_29 = arith.constant 1 : index
    %c3_30 = arith.constant 3 : index
    %91 = memref.load %arg5[%c1_29, %c3_30] : memref<4x4xf32, #tpu.memory_space<smem>>
    %92 = vector.extract_strided_slice %36 {offsets = [3, 0, 0], sizes = [1, 8, 16], strides = [1, 1, 1]} : vector<4x8x16xf32> to vector<1x8x16xf32>
    %93 = vector.shape_cast %92 : vector<1x8x16xf32> to vector<8x16xf32>
    %94 = vector.broadcast %91 : f32 to vector<8x16xf32>
    %95 = arith.mulf %94, %93 : vector<8x16xf32>
    %96 = arith.addf %90, %95 : vector<8x16xf32>
    %c1_31 = arith.constant 1 : index
    %97 = memref.load %arg6[%c1_31] : memref<4xf32, #tpu.memory_space<smem>>
    %98 = vector.broadcast %97 : f32 to vector<8x16xf32>
    %99 = arith.addf %96, %98 : vector<8x16xf32>
    %100 = arith.negf %99 : vector<8x16xf32>
    %101 = math.exp %100 : vector<8x16xf32>
    %cst_32 = arith.constant 1.000000e+00 : f32
    %102 = vector.broadcast %cst_32 : f32 to vector<8x16xf32>
    %103 = arith.addf %102, %101 : vector<8x16xf32>
    %104 = arith.divf %102, %103 : vector<8x16xf32>
    %105 = vector.extract_strided_slice %1 {offsets = [1, 0, 0], sizes = [1, 8, 16], strides = [1, 1, 1]} : vector<4x8x16xf32> to vector<1x8x16xf32>
    %106 = vector.shape_cast %105 : vector<1x8x16xf32> to vector<8x16xf32>
    %107 = arith.addf %106, %104 : vector<8x16xf32>
    %c0_33 = arith.constant 0 : index
    %c1_34 = arith.constant 1 : index
    %c0_35 = arith.constant 0 : index
    %c0_36 = arith.constant 0 : index
    %108 = vector.load %arg7[%c0_33, %c1_34, %c0_35, %c0_36] : memref<1x4x8x16xf32, #tpu.memory_space<vmem>>, vector<1x1x8x16xf32>
    %109 = vector.shape_cast %108 : vector<1x1x8x16xf32> to vector<8x16xf32>
    %110 = vector.shape_cast %107 : vector<8x16xf32> to vector<1x1x8x16xf32>
    tpu.vector_store %arg7[%c0_33, %c1_34, %c0_35, %c0_36], %110 {strides = array<i32>} : memref<1x4x8x16xf32, #tpu.memory_space<vmem>>, vector<1x1x8x16xf32>,
    %c2_37 = arith.constant 2 : index
    %c0_38 = arith.constant 0 : index
    %111 = memref.load %arg5[%c2_37, %c0_38] : memref<4x4xf32, #tpu.memory_space<smem>>
    %112 = vector.extract_strided_slice %36 {offsets = [0, 0, 0], sizes = [1, 8, 16], strides = [1, 1, 1]} : vector<4x8x16xf32> to vector<1x8x16xf32>
    %113 = vector.shape_cast %112 : vector<1x8x16xf32> to vector<8x16xf32>
    %114 = vector.broadcast %111 : f32 to vector<8x16xf32>
    %115 = arith.mulf %114, %113 : vector<8x16xf32>
    %c2_39 = arith.constant 2 : index
    %c1_40 = arith.constant 1 : index
    %116 = memref.load %arg5[%c2_39, %c1_40] : memref<4x4xf32, #tpu.memory_space<smem>>
    %117 = vector.extract_strided_slice %36 {offsets = [1, 0, 0], sizes = [1, 8, 16], strides = [1, 1, 1]} : vector<4x8x16xf32> to vector<1x8x16xf32>
    %118 = vector.shape_cast %117 : vector<1x8x16xf32> to vector<8x16xf32>
    %119 = vector.broadcast %116 : f32 to vector<8x16xf32>
    %120 = arith.mulf %119, %118 : vector<8x16xf32>
    %121 = arith.addf %115, %120 : vector<8x16xf32>
    %c2_41 = arith.constant 2 : index
    %c2_42 = arith.constant 2 : index
    %122 = memref.load %arg5[%c2_41, %c2_42] : memref<4x4xf32, #tpu.memory_space<smem>>
    %123 = vector.extract_strided_slice %36 {offsets = [2, 0, 0], sizes = [1, 8, 16], strides = [1, 1, 1]} : vector<4x8x16xf32> to vector<1x8x16xf32>
    %124 = vector.shape_cast %123 : vector<1x8x16xf32> to vector<8x16xf32>
    %125 = vector.broadcast %122 : f32 to vector<8x16xf32>
    %126 = arith.mulf %125, %124 : vector<8x16xf32>
    %127 = arith.addf %121, %126 : vector<8x16xf32>
    %c2_43 = arith.constant 2 : index
    %c3_44 = arith.constant 3 : index
    %128 = memref.load %arg5[%c2_43, %c3_44] : memref<4x4xf32, #tpu.memory_space<smem>>
    %129 = vector.extract_strided_slice %36 {offsets = [3, 0, 0], sizes = [1, 8, 16], strides = [1, 1, 1]} : vector<4x8x16xf32> to vector<1x8x16xf32>
    %130 = vector.shape_cast %129 : vector<1x8x16xf32> to vector<8x16xf32>
    %131 = vector.broadcast %128 : f32 to vector<8x16xf32>
    %132 = arith.mulf %131, %130 : vector<8x16xf32>
    %133 = arith.addf %127, %132 : vector<8x16xf32>
    %c2_45 = arith.constant 2 : index
    %134 = memref.load %arg6[%c2_45] : memref<4xf32, #tpu.memory_space<smem>>
    %135 = vector.broadcast %134 : f32 to vector<8x16xf32>
    %136 = arith.addf %133, %135 : vector<8x16xf32>
    %137 = arith.negf %136 : vector<8x16xf32>
    %138 = math.exp %137 : vector<8x16xf32>
    %cst_46 = arith.constant 1.000000e+00 : f32
    %139 = vector.broadcast %cst_46 : f32 to vector<8x16xf32>
    %140 = arith.addf %139, %138 : vector<8x16xf32>
    %141 = arith.divf %139, %140 : vector<8x16xf32>
    %142 = vector.extract_strided_slice %1 {offsets = [2, 0, 0], sizes = [1, 8, 16], strides = [1, 1, 1]} : vector<4x8x16xf32> to vector<1x8x16xf32>
    %143 = vector.shape_cast %142 : vector<1x8x16xf32> to vector<8x16xf32>
    %144 = arith.addf %143, %141 : vector<8x16xf32>
    %c0_47 = arith.constant 0 : index
    %c2_48 = arith.constant 2 : index
    %c0_49 = arith.constant 0 : index
    %c0_50 = arith.constant 0 : index
    %145 = vector.load %arg7[%c0_47, %c2_48, %c0_49, %c0_50] : memref<1x4x8x16xf32, #tpu.memory_space<vmem>>, vector<1x1x8x16xf32>
    %146 = vector.shape_cast %145 : vector<1x1x8x16xf32> to vector<8x16xf32>
    %147 = vector.shape_cast %144 : vector<8x16xf32> to vector<1x1x8x16xf32>
    tpu.vector_store %arg7[%c0_47, %c2_48, %c0_49, %c0_50], %147 {strides = array<i32>} : memref<1x4x8x16xf32, #tpu.memory_space<vmem>>, vector<1x1x8x16xf32>,
    %c3_51 = arith.constant 3 : index
    %c0_52 = arith.constant 0 : index
    %148 = memref.load %arg5[%c3_51, %c0_52] : memref<4x4xf32, #tpu.memory_space<smem>>
    %149 = vector.extract_strided_slice %36 {offsets = [0, 0, 0], sizes = [1, 8, 16], strides = [1, 1, 1]} : vector<4x8x16xf32> to vector<1x8x16xf32>
    %150 = vector.shape_cast %149 : vector<1x8x16xf32> to vector<8x16xf32>
    %151 = vector.broadcast %148 : f32 to vector<8x16xf32>
    %152 = arith.mulf %151, %150 : vector<8x16xf32>
    %c3_53 = arith.constant 3 : index
    %c1_54 = arith.constant 1 : index
    %153 = memref.load %arg5[%c3_53, %c1_54] : memref<4x4xf32, #tpu.memory_space<smem>>
    %154 = vector.extract_strided_slice %36 {offsets = [1, 0, 0], sizes = [1, 8, 16], strides = [1, 1, 1]} : vector<4x8x16xf32> to vector<1x8x16xf32>
    %155 = vector.shape_cast %154 : vector<1x8x16xf32> to vector<8x16xf32>
    %156 = vector.broadcast %153 : f32 to vector<8x16xf32>
    %157 = arith.mulf %156, %155 : vector<8x16xf32>
    %158 = arith.addf %152, %157 : vector<8x16xf32>
    %c3_55 = arith.constant 3 : index
    %c2_56 = arith.constant 2 : index
    %159 = memref.load %arg5[%c3_55, %c2_56] : memref<4x4xf32, #tpu.memory_space<smem>>
    %160 = vector.extract_strided_slice %36 {offsets = [2, 0, 0], sizes = [1, 8, 16], strides = [1, 1, 1]} : vector<4x8x16xf32> to vector<1x8x16xf32>
    %161 = vector.shape_cast %160 : vector<1x8x16xf32> to vector<8x16xf32>
    %162 = vector.broadcast %159 : f32 to vector<8x16xf32>
    %163 = arith.mulf %162, %161 : vector<8x16xf32>
    %164 = arith.addf %158, %163 : vector<8x16xf32>
    %c3_57 = arith.constant 3 : index
    %c3_58 = arith.constant 3 : index
    %165 = memref.load %arg5[%c3_57, %c3_58] : memref<4x4xf32, #tpu.memory_space<smem>>
    %166 = vector.extract_strided_slice %36 {offsets = [3, 0, 0], sizes = [1, 8, 16], strides = [1, 1, 1]} : vector<4x8x16xf32> to vector<1x8x16xf32>
    %167 = vector.shape_cast %166 : vector<1x8x16xf32> to vector<8x16xf32>
    %168 = vector.broadcast %165 : f32 to vector<8x16xf32>
    %169 = arith.mulf %168, %167 : vector<8x16xf32>
    %170 = arith.addf %164, %169 : vector<8x16xf32>
    %c3_59 = arith.constant 3 : index
    %171 = memref.load %arg6[%c3_59] : memref<4xf32, #tpu.memory_space<smem>>
    %172 = vector.broadcast %171 : f32 to vector<8x16xf32>
    %173 = arith.addf %170, %172 : vector<8x16xf32>
    %174 = arith.negf %173 : vector<8x16xf32>
    %175 = math.exp %174 : vector<8x16xf32>
    %cst_60 = arith.constant 1.000000e+00 : f32
    %176 = vector.broadcast %cst_60 : f32 to vector<8x16xf32>
    %177 = arith.addf %176, %175 : vector<8x16xf32>
    %178 = arith.divf %176, %177 : vector<8x16xf32>
    %179 = vector.extract_strided_slice %1 {offsets = [3, 0, 0], sizes = [1, 8, 16], strides = [1, 1, 1]} : vector<4x8x16xf32> to vector<1x8x16xf32>
    %180 = vector.shape_cast %179 : vector<1x8x16xf32> to vector<8x16xf32>
    %181 = arith.addf %180, %178 : vector<8x16xf32>
    %c0_61 = arith.constant 0 : index
    %c3_62 = arith.constant 3 : index
    %c0_63 = arith.constant 0 : index
    %c0_64 = arith.constant 0 : index
    %182 = vector.load %arg7[%c0_61, %c3_62, %c0_63, %c0_64] : memref<1x4x8x16xf32, #tpu.memory_space<vmem>>, vector<1x1x8x16xf32>
    %183 = vector.shape_cast %182 : vector<1x1x8x16xf32> to vector<8x16xf32>
    %184 = vector.shape_cast %181 : vector<8x16xf32> to vector<1x1x8x16xf32>
    tpu.vector_store %arg7[%c0_61, %c3_62, %c0_63, %c0_64], %184 {strides = array<i32>} : memref<1x4x8x16xf32, #tpu.memory_space<vmem>>, vector<1x1x8x16xf32>,
    return
  }
  func.func @transform_0(%arg0: i32, %arg1: i32) -> (i32, i32, i32, i32) {
    %c0_i32 = arith.constant 0 : i32
    %c0_i32_0 = arith.constant 0 : i32
    %c0_i32_1 = arith.constant 0 : i32
    return %arg0, %c0_i32, %arg1, %c0_i32_0 : i32, i32, i32, i32
  }
  func.func @transform_1(%arg0: i32, %arg1: i32) -> (i32, i32, i32, i32) {
    %c1_i32 = arith.constant 1 : i32
    %0 = arith.muli %arg1, %c1_i32 : i32
    %c1_i32_0 = arith.constant 1 : i32
    %1 = arith.subi %0, %c1_i32_0 : i32
    %c0_i32 = arith.constant 0 : i32
    %2 = arith.maxsi %1, %c0_i32 : i32
    %c0_i32_1 = arith.constant 0 : i32
    %c0_i32_2 = arith.constant 0 : i32
    %c0_i32_3 = arith.constant 0 : i32
    return %arg0, %c0_i32_1, %2, %c0_i32_2 : i32, i32, i32, i32
  }
  func.func @transform_2(%arg0: i32, %arg1: i32) -> (i32, i32, i32, i32) {
    %c1_i32 = arith.constant 1 : i32
    %0 = arith.addi %arg1, %c1_i32 : i32
    %c1_i32_0 = arith.constant 1 : i32
    %1 = arith.muli %0, %c1_i32_0 : i32
    %c1_i32_1 = arith.constant 1 : i32
    %2 = arith.minsi %1, %c1_i32_1 : i32
    %c0_i32 = arith.constant 0 : i32
    %c0_i32_2 = arith.constant 0 : i32
    %c0_i32_3 = arith.constant 0 : i32
    return %arg0, %c0_i32, %2, %c0_i32_2 : i32, i32, i32, i32
  }
  func.func @transform_3(%arg0: i32, %arg1: i32) -> (i32, i32) {
    %c0_i32 = arith.constant 0 : i32
    %c0_i32_0 = arith.constant 0 : i32
    %c0_i32_1 = arith.constant 0 : i32
    return %c0_i32, %c0_i32_0 : i32, i32
  }
  func.func @transform_4(%arg0: i32, %arg1: i32) -> i32 {
    %c0_i32 = arith.constant 0 : i32
    %c0_i32_0 = arith.constant 0 : i32
    return %c0_i32 : i32
  }
  func.func @transform_5(%arg0: i32, %arg1: i32) -> (i32, i32, i32, i32) {
    %c0_i32 = arith.constant 0 : i32
    %c0_i32_0 = arith.constant 0 : i32
    %c0_i32_1 = arith.constant 0 : i32
    return %arg0, %c0_i32, %arg1, %c0_i32_0 : i32, i32, i32, i32
  }
}

</mosaic_0001>

<bundles_post_ra>
// kernel: tpu_custom_call.1
= control target key start
LH: loop header
LB: loop body
LE: loop exit
PB: predicated region body
PF: predicated region fallthrough
CT: control target
= control target key end

     0   :  { %s2109_s0 = inlined_call_operand.hbm [shape: f32[2,4,16,16], index: 0, kind: input, shape index: {}]   ;;  %s2110_s1 = inlined_call_operand.hbm [shape: f32[2,4,16,16], index: 1, kind: input, shape index: {}]   ;;  %s2111_s2 = inlined_call_operand.hbm [shape: f32[2,4,16,16], index: 2, kind: input, shape index: {}]   ;;  %s2112_s3 = inlined_call_operand.vmem [shape: f32[4,4], index: 3, kind: input, shape index: {}]   ;;  %s2113_s4 = inlined_call_operand.vmem [shape: f32[4], index: 4, kind: input, shape index: {}]   ;;  %s2114_s5 = inlined_call_operand.hbm [shape: f32[2,4,16,16], index: 5, kind: output, shape index: {}]  }
   0x1   :  { %2139 = sst [smem:[#allocation30_spill]] %s2109_s0 }
   0x2   :  { %2140 = sst [smem:[#allocation31_spill]] %s2110_s1 }
   0x3   :  { %2141 = sst [smem:[#allocation32_spill]] %s2112_s3 }
   0x4   :  { %2142 = sst [smem:[#allocation33_spill]] %s2113_s4 }
   0x5   :  { %2143 = sst [smem:[#allocation34_spill]] %s2114_s5 }
   0x6   :  { %10 = vsyncpa [#allocation3], 0 }
   0x7   :  { %12 = vsyncpa [#allocation3 + $0x1], 0 }
   0x8   :  { %13 = vsyncpa [#allocation7], 0 }
   0x9   :  { %15 = vsyncpa [#allocation7 + $0x1], 0 }
   0xa   :  { %16 = vsyncpa [#allocation5], 0 }
   0xb   :  { %17 = vsyncpa [#allocation11], 0 }
   0xc   :  { %18 = vsyncpa [#allocation4], 0 }
   0xd   :  { %20 = vsyncpa [#allocation4 + $0x1], 0  ;;  %s1497_s18 = smov 0   ;;  %s1499_s19 = smov 0  }
   0xe   :  { %s1501_s20 = smov 0   ;;  %s1503_s21 = smov 0  }
   0xf   :  { %s1505_s22 = smov 0   ;;  %s1507_s23 = smov 0  }
  0x10   :  { %s1509_s24 = smov 0   ;;  %s1511_s25 = smov 0  }
  0x11   :  { %s1513_s26 = smov 0   ;;  %s1515_s27 = smov 0  }
  0x12   :  { %s1517_s28 = smov 0   ;;  %s1519_s29 = smov 0  }
  0x13   :  { %s1521_s30 = smov 0   ;;  %s1523_s6 = smov 0  }
  0x14 LB: > { %2144 = sst [smem:[#allocation19_spill]] %s1418_s23  ;;  %s35_s7 = sadd.s32 1, %s1442_s29  ;;  %s1450_s6 = sphi %s1523_s6, %s26_s6   ;;  %s1446_s30 = sphi %s1521_s30, %s2212_s30   ;;  %s1442_s29 = sphi %s1519_s29, %s2202_s29   ;;  %s1438_s28 = sphi %s1517_s28, %s2211_s28   ;;  %s1434_s27 = sphi %s1515_s27, %s2201_s27   ;;  %s1430_s26 = sphi %s1513_s26, %s2200_s26   ;;  %s1426_s25 = sphi %s1511_s25, %s2210_s25   ;;  %s1422_s24 = sphi %s1509_s24, %s2209_s24   ;;  %s1418_s23 = sphi %s1507_s23, %s2198_s23   ;;  %s1414_s22 = sphi %s1505_s22, %s2208_s22   ;;  %s1410_s21 = sphi %s1503_s21, %s2207_s21   ;;  %s1406_s20 = sphi %s1501_s20, %s2206_s20   ;;  %s1402_s19 = sphi %s1499_s19, %s2205_s19   ;;  %s1398_s18 = sphi %s1497_s18, %s2204_s18  }
  0x15   : > { %2145 = sst [smem:[#allocation20_spill]] %s1422_s24  ;;  %s38_s8 = sadd.s32 1, %s1446_s30 }
  0x16   : > { %2146 = sst [smem:[#allocation21_spill]] %s1430_s26  ;;  %p36_p0 = scmp.ge.s32.totalorder %s35_s7, 2 }
  0x17   : > { %2147 = sst [smem:[#allocation22_spill]] %s1434_s27  ;;  %p2122_p1 = scmp.eq.s32.totalorder %s1450_s6, 0 }
  0x18   : > { %2148 = sst [smem:[#allocation23_spill]] %s1438_s28  ;;  %s81_s9 = sadd.s32 1, %s1418_s23 }
  0x19   : > { %2149 = sst [smem:[#allocation24_spill]] %s1442_s29  ;;  %s2214_s7 = smov (%p36_p0, %s35_s7), 0 }
  0x1a   : > { %2150 = sst [smem:[#allocation25_spill]] %s2214_s7  ;;  %s2216_s8 = smov (!%p36_p0, %s38_s8), %s1446_s30 }
  0x1b   : > { %s43_s10 = ssub.s32 %s1442_s29, %s2214_s7  ;;  %p40_p2 = scmp.ge.s32.totalorder %s2216_s8, 2 }
  0x1c   : > { %p88_p3 = scmp.ne.s32.totalorder %s1418_s23, %s1414_s22  ;;  %p2121_p6 = scmp.lt.s32.totalorder %s1450_s6, 4 }
  0x1d   : > { %s2218_s8 = smov (%p40_p2, %s2216_s8), 0  ;;  %s266_s15 = sand.u32 1, %s1450_s6  }
  0x1e   : > { %2151 = sst [smem:[#allocation26_spill]] %s2218_s8  ;;  %s1582_s11 = ssub.s32 %s1446_s30, %s2218_s8 }
  0x1f   : > { %s1585_s12 = sor.u32 %s43_s10, %s1582_s11  ;;  %p1589_p4 = por %p88_p3, %p2122_p1 }
  0x20   : > { %p2120_p7 = scmp.eq.s32.totalorder %s1582_s11, 0  ;;  %s268_s16 = sand.u32 1, %s1418_s23  }
  0x21   : > { %s938_s8 = sshll.u32 %s268_s16, 5  ;;  %s2119_s7 = sshll.u32 %s1446_s30, 10 }
  0x22   : > { %s1602_s17 = scalar_select %p2120_p7, %s1418_s23, %s81_s9  }
  0x23   : > { %s2154_s1 = sld [smem:[#allocation31_spill]]  ;;  %s270_s27 = scalar_lea.vmem [#allocation6], %s938_s8 }
  0x24   : > { %2153 = sst [smem:[#allocation27_spill]] %s1602_s17  ;;  %s281_s14 = sshll.u32 %s270_s27, 4  ;;  %s1612_s14 = int_to_ptr.vmem [resolvable:$true] %s281_s14 }
  0x25   : > { %p1618_p8 = pnand %p2121_p6, %p1589_p4  ;;  %s1622_s16 = scalar_lea.sflag [#allocation7], %s266_s15 }
  0x27   : > { %p1166_p10 = pneg %p1618_p8 }
  0x29   : > { %s1610_s28 = scalar_lea.hbm %s2154_s1, %s2119_s7  ;;  %s1169_s13 = scalar_lea.hbm %s2154_s1, 2048 }
  0x2a   : > { %s1164_s5 = scalar_lea.hbm %s1610_s28, 512  ;;  %p1170_p13 = scmp.lt.u32.totalorder %s1610_s28, %s2154_s1 }
  0x2b   : > { %p1165_p9 = scmp.ne.s32.totalorder %s1610_s28, %s1164_s5  ;;  %p1171_p0 = scmp.lt.u32.totalorder %s1169_s13, %s1164_s5 }
  0x2c   : > { %p1173_p3 = scmp.lt.u32.totalorder %s1164_s5, %s1610_s28 }
  0x2d   : > { %p1167_p11 = pnand %p1166_p10, %p1165_p9  ;;  %p1172_p2 = por %p1171_p0, %p1170_p13 }
  0x2f   : > { %p1168_p12 = pneg %p1167_p11  ;;  %p1174_p4 = por %p1173_p3, %p1172_p2 }
  0x31   : > { %p1175_p7 = pnand %p1174_p4, %p1168_p12 }
  0x33   : > { %1178 = shalt.err (!%p1175_p7)
}
  0x34   : > { %s1179_s15 = scalar_lea.vmem %s1612_s14, 512  ;;  %s1452_s27 = smov [#allocation6]  }
  0x35   : > { %p1180_p9 = scmp.ne.s32.totalorder %s1612_s14, %s1179_s15  ;;  %s1184_s8 = sshll.u32 %s1452_s27, 4  ;;  %s1185_s8 = int_to_ptr.vmem [resolvable:$false] %s1184_s8 }
  0x36   : > { %s1186_s7 = scalar_lea.vmem %s1185_s8, 1024  ;;  %p1187_p1 = scmp.lt.s32.totalorder %s1612_s14, %s1185_s8 }
  0x37   : > { %p1182_p11 = pnand %p1180_p9, %p1166_p10  ;;  %p1188_p13 = scmp.lt.s32.totalorder %s1186_s7, %s1179_s15 }
  0x39   : > { %p1183_p6 = pneg %p1182_p11  ;;  %p1189_p0 = por %p1188_p13, %p1187_p1 }
  0x3b   : > { %p1190_p2 = pnand %p1189_p0, %p1183_p6 }
  0x3d   : > { %1193 = shalt.err (!%p1190_p2)
}
  0x3e   : > { %s2123_s5 = smov 256   ;;  %s2125_s13 = smov 128  }
  0x3f   : > { %s2127_s10 = smov 8   ;;  %s1654_s15 = sadd.s32 4294967295, %s1450_s6  }
  0x40   : > { %1011 = dma.hbm_to_vmem [thread:$0]  (!%p1618_p8), %s1610_s28, 512, %s1612_s14, %s1622_s16, %s2123_s5, %s2125_s13, %s2127_s10  }
  0x41   : > { %s928_s27 = sadd.s32 4294967294, %s1450_s6   ;;  %p60_p1 = scmp.ne.s32.totalorder %s1426_s25, %s1422_s24 }
  0x42   : > { %p2131_p6 = scmp.eq.s32.totalorder %s1654_s15, 0  ;;  %p94_p7 = scmp.ne.s32.totalorder %s1414_s22, %s1410_s21 }
  0x43   : > { %p128_p10 = scmp.ne.s32.totalorder %s1402_s19, %s1398_s18  ;;  %p202_p9 = scmp.eq.s32.totalorder %s928_s27, 3 }
  0x44   : > { %p1667_p3 = por %p2131_p6, %p60_p1  ;;  %p1673_p8 = por %p94_p7, %p2131_p6 }
  0x45   : > { %p1679_p4 = por %p128_p10, %p2131_p6  ;;  %p931_p11 = scmp.ge.s32.totalorder %s1450_s6, 1 }
  0x46   : > { %s2156_s28 = scalar_select %p1667_p3, 1, 0 }
  0x47   : > { %s2157_s14 = scalar_select %p1673_p8, 1, 0 }
  0x48   : > { %s2158_s9 = scalar_select %p1679_p4, 1, 0 }
  0x49   : > { %p209_p13 = scmp.lt.s32.totalorder %s1450_s6, 5  ;;  %p1685_p0 = por %p202_p9, %p60_p1 }
  0x4a   : > { %s2162_s3 = sld [smem:[#allocation32_spill]]  ;;  %s2163_s4 = sld [smem:[#allocation33_spill]] }
  0x4b   : > { %s2159_s18 = scalar_select %p1685_p0, 1, 0 }
  0x4c   : > { %p1689_p2 = pnand %p931_p11, %p209_p13  ;;  %s2165_s17 = sshll.u32 %s1446_s30, 3 }
  0x4d   : > { %2160 = sst [smem:[#allocation28_spill]] %s2159_s18  ;;  %s1710_s23 = sadd.s32 %s1442_s29, %s2165_s17 }
  0x4e   : > { %s2161_s21 = scalar_select %p1689_p2, 1, 0 }
  0x4f   : > { %p998_p7 = pneg %p1689_p2  ;;  %s47_s8 = sadd.s32 1, %s1430_s26 }
  0x50   : > { %s222_s5 = sshll.u32 %s2162_s3, 4  ;;  %s233_s10 = sshll.u32 %s2163_s4, 4  ;;  %s223_s5 = int_to_ptr.vmem [resolvable:$true] %s222_s5  ;;  %s234_s10 = int_to_ptr.vmem [resolvable:$true] %s233_s10 }
  0x51   : > { %p1703_p1 = pnand %p998_p7, %p2131_p6  ;;  %s1194_s7 = scalar_lea.vmem %s223_s5, 64 }
  0x52   : > { %p1195_p10 = scmp.ne.s32.totalorder %s223_s5, %s1194_s7  ;;  %p1202_p12 = scmp.lt.s32.totalorder %s223_s5, %s223_s5 }
  0x53   : > { %p1196_p9 = pneg %p1703_p1  ;;  %p1203_p5 = scmp.lt.s32.totalorder %s1194_s7, %s1194_s7 }
  0x55   : > { %p1197_p11 = pnand %p1196_p9, %p1195_p10  ;;  %p1204_p0 = por %p1203_p5, %p1202_p12 }
  0x57   : > { %p1198_p13 = pneg %p1197_p11 }
  0x59   : > { %p1205_p4 = pnand %p1204_p0, %p1198_p13 }
  0x5b   : > { %1208 = shalt.err (!%p1205_p4)
}
  0x5c   : > { %s1456_s13 = smov [#allocation9]   ;;  %s1209_s27 = scalar_lea.vmem %s234_s10, 16 }
  0x5d   : > { %1001 = dma.vmem_to_smem (!%p1703_p1), %s223_s5, 64, %s1456_s13, [#allocation5]  }
  0x5e   : > { %p1210_p7 = scmp.ne.s32.totalorder %s234_s10, %s1209_s27  ;;  %p1217_p3 = scmp.lt.s32.totalorder %s234_s10, %s234_s10 }
  0x5f   : > { %p1218_p2 = scmp.lt.s32.totalorder %s1209_s27, %s1209_s27 }
  0x60   : > { %p1212_p6 = pnand %p1210_p7, %p1196_p9 }
  0x61   : > { %p1219_p10 = por %p1218_p2, %p1217_p3 }
  0x62   : > { %p1213_p8 = pneg %p1212_p6 }
  0x64   : > { %p1220_p11 = pnand %p1219_p10, %p1213_p8 }
  0x66   : > { %1223 = shalt.err (!%p1220_p11)
}
  0x67   : > { %s1457_s17 = smov [#allocation10]   ;;  %p2166_p5 = scmp.eq.s32.totalorder %s1585_s12, 0 }
  0x68   : > { %1004 = dma.vmem_to_smem (!%p1703_p1), %s234_s10, 16, %s1457_s17, [#allocation11]  }
  0x69   : > { %s1722_s5 = scalar_select %p2166_p5, %s1430_s26, %s47_s8  }
  0x6a   : > { %p54_p6 = scmp.ne.s32.totalorder %s1430_s26, %s1426_s25  ;;  %s244_s7 = sand.u32 1, %s1430_s26  }
  0x6b   : > { %2167 = sst [smem:[#allocation29_spill]] %s1722_s5  ;;  %s935_s13 = sshll.u32 %s244_s7, 5 }
  0x6c   : > { %p2168_p12 = scmp.eq.s32.totalorder %s1450_s6, 0  ;;  %p2169_p8 = scmp.eq.s32.totalorder %s1654_s15, 3 }
  0x6d   : > { %s937_s27 = sshll.u32 %s1710_s23, 7  ;;  %s2171_s0 = sld [smem:[#allocation30_spill]] }
  0x6e   : > { %p56_p3 = por %p2168_p12, %p54_p6  ;;  %p1731_p4 = por %p2169_p8, %p54_p6 }
  0x6f   : > { %s248_s12 = scalar_lea.vmem [#allocation2], %s935_s13  ;;  %p2172_p0 = scmp.lt.s32.totalorder %s1450_s6, 4 }
  0x70   : > { %s256_s10 = sshll.u32 %s248_s12, 4  ;;  %s1749_s23 = scalar_lea.sflag [#allocation3], %s244_s7  ;;  %s1741_s10 = int_to_ptr.vmem [resolvable:$true] %s256_s10 }
  0x71   : > { %p1745_p2 = pnand %p2172_p0, %p56_p3 }
  0x73   : > { %s1739_s29 = scalar_lea.hbm %s2171_s0, %s937_s27  ;;  %p1226_p9 = pneg %p1745_p2 }
  0x74   : > { %s1224_s3 = scalar_lea.hbm %s1739_s29, 512  ;;  %s1229_s13 = scalar_lea.hbm %s2171_s0, 2048 }
  0x75   : > { %p1225_p1 = scmp.ne.s32.totalorder %s1739_s29, %s1224_s3  ;;  %p1230_p10 = scmp.lt.u32.totalorder %s1739_s29, %s2171_s0 }
  0x76   : > { %p1231_p11 = scmp.lt.u32.totalorder %s1229_s13, %s1224_s3  ;;  %p1233_p6 = scmp.lt.u32.totalorder %s1224_s3, %s1739_s29 }
  0x77   : > { %p1227_p13 = pnand %p1226_p9, %p1225_p1 }
  0x78   : > { %p1232_p5 = por %p1231_p11, %p1230_p10 }
  0x79   : > { %p1228_p7 = pneg %p1227_p13 }
  0x7a   : > { %p1234_p12 = por %p1233_p6, %p1232_p5 }
  0x7c   : > { %p1235_p3 = pnand %p1234_p12, %p1228_p7 }
  0x7e   : > { %1238 = shalt.err (!%p1235_p3)
}
  0x7f   : > { %s1239_s7 = scalar_lea.vmem %s1741_s10, 512  ;;  %s1458_s4 = smov [#allocation2]  }
  0x80   : > { %p1240_p8 = scmp.ne.s32.totalorder %s1741_s10, %s1239_s7  ;;  %s1244_s17 = sshll.u32 %s1458_s4, 4  ;;  %s1245_s17 = int_to_ptr.vmem [resolvable:$false] %s1244_s17 }
  0x81   : > { %s1246_s27 = scalar_lea.vmem %s1245_s17, 1024  ;;  %p1247_p13 = scmp.lt.s32.totalorder %s1741_s10, %s1245_s17 }
  0x82   : > { %p1242_p0 = pnand %p1240_p8, %p1226_p9  ;;  %p1248_p10 = scmp.lt.s32.totalorder %s1246_s27, %s1239_s7 }
  0x84   : > { %p1243_p1 = pneg %p1242_p0  ;;  %p1249_p11 = por %p1248_p10, %p1247_p13 }
  0x86   : > { %p1250_p5 = pnand %p1249_p11, %p1243_p1 }
  0x88   : > { %1253 = shalt.err (!%p1250_p5)
}
  0x89   : > { %s2174_s3 = smov 8   ;;  %s2175_s13 = smov 128  }
  0x8a   : > { %s2176_s12 = smov 256   ;;  %s115_s7 = sadd.s32 1, %s1406_s20 }
  0x8b   : > { %1008 = dma.hbm_to_vmem [thread:$0]  (!%p1745_p2), %s1739_s29, 512, %s1741_s10, %s1749_s23, %s2176_s12, %s2175_s13, %s2174_s3  }
  0x8c   : > { %p122_p9 = scmp.ne.s32.totalorder %s1406_s20, %s1402_s19  ;;  %s293_s4 = sand.u32 1, %s1406_s20  }
  0x8d   : > { %p2177_p7 = scmp.eq.s32.totalorder %s1450_s6, 0  ;;  %s942_s8 = sshll.u32 %s293_s4, 5 }
  0x8e   : > { %s2178_s17 = sshll.u32 %s1446_s30, 10  ;;  %s295_s18 = scalar_lea.vmem [#allocation8], %s942_s8 }
  0x8f   : > { %p124_p6 = por %p122_p9, %p2177_p7  ;;  %s1394_s27 = sadd.s32 128, %s2178_s17 }
  0x90   : > { %s1791_s26 = scalar_lea.hbm %s2111_s2, %s1394_s27  ;;  %s306_s24 = sshll.u32 %s295_s18, 4  ;;  %s1804_s24 = int_to_ptr.vmem [resolvable:$true] %s306_s24 }
  0x91   : > { %p2179_p2 = scmp.lt.s32.totalorder %s1450_s6, 4  ;;  %p2181_p3 = scmp.eq.s32.totalorder %s1582_s11, 0 }
  0x92   : > { %s1254_s0 = scalar_lea.hbm %s1791_s26, 512  ;;  %s1259_s23 = scalar_lea.hbm %s2111_s2, 2048 }
  0x93   : > { %p1795_p12 = pnand %p2179_p2, %p124_p6  ;;  %p1255_p8 = scmp.ne.s32.totalorder %s1791_s26, %s1254_s0 }
  0x94   : > { %s1802_s10 = scalar_select %p2181_p3, %s1406_s20, %s115_s7  }
  0x95   : > { %p1256_p0 = pneg %p1795_p12  ;;  %p1260_p10 = scmp.lt.u32.totalorder %s1791_s26, %s2111_s2 }
  0x96   : > { %p1261_p11 = scmp.lt.u32.totalorder %s1259_s23, %s1254_s0  ;;  %p1263_p9 = scmp.lt.u32.totalorder %s1254_s0, %s1791_s26 }
  0x97   : > { %p1257_p1 = pnand %p1256_p0, %p1255_p8 }
  0x98   : > { %p1262_p5 = por %p1261_p11, %p1260_p10 }
  0x99   : > { %p1258_p13 = pneg %p1257_p1 }
  0x9a   : > { %p1264_p7 = por %p1263_p9, %p1262_p5 }
  0x9c   : > { %p1265_p6 = pnand %p1264_p7, %p1258_p13 }
  0x9e   : > { %1268 = shalt.err (!%p1265_p6)
}
  0x9f   : > { %s1269_s7 = scalar_lea.vmem %s1804_s24, 512  ;;  %s1459_s8 = smov [#allocation8]  }
  0xa0   : > { %p1270_p2 = scmp.ne.s32.totalorder %s1804_s24, %s1269_s7  ;;  %s1274_s17 = sshll.u32 %s1459_s8, 4  ;;  %s1275_s17 = int_to_ptr.vmem [resolvable:$false] %s1274_s17 }
  0xa1   : > { %s1276_s27 = scalar_lea.vmem %s1275_s17, 1024  ;;  %p1277_p1 = scmp.lt.s32.totalorder %s1804_s24, %s1275_s17 }
  0xa2   : > { %p1272_p3 = pnand %p1270_p2, %p1256_p0  ;;  %p1278_p10 = scmp.lt.s32.totalorder %s1276_s27, %s1269_s7 }
  0xa4   : > { %p1273_p8 = pneg %p1272_p3  ;;  %p1279_p11 = por %p1278_p10, %p1277_p1 }
  0xa6   : > { %p1280_p5 = pnand %p1279_p11, %p1273_p8 }
  0xa8   : > { %1283 = shalt.err (!%p1280_p5)
}
  0xa9   : > { %1014 = dma.hbm_to_vmem [thread:$0]  (!%p1795_p12), %s1791_s26, 512, %s1804_s24, %s1622_s16, %s2176_s12, %s2175_s13, %s2174_s3  }
  0xaa   : > { %p2182_p0 = scmp.ne.s32.totalorder %s2161_s21, 0 }
  0xab   : > { %s1838_s0 = sand.u32 (!%p2182_p0), 1, %s1426_s25   ;;  %p2183_p13 = scmp.ne.s32.totalorder (!%p2182_p0), %s2156_s28, 0 }
  0xac   : > { %318 = sbr.rel (%p2182_p0) target bundleno = 548 (0x224), region = 40  ;;  %s946_s18 = sshll.u32 (!%p2182_p0), %s1838_s0, 5 }
  0xad   : > { %s321_s5 = scalar_lea.sflag (!%p2182_p0), [#allocation3], %s1838_s0  ;;  %s1844_s29 = scalar_lea.vmem (!%p2182_p0), [#allocation2], %s946_s18 }
  0xb3   : > { %1369 = dma.done.wait (%p2183_p13), %s321_s5, 512  }
  0xb4   : > { %1371 = vsyncadd (%p2183_p13), %s321_s5, 4294966784  ;;  %s329_s24 = sand.u32 1, %s1654_s15   ;;  %s331_s26 = sand.u32 1, %s1414_s22  }
  0xb5   : > { %s947_s16 = sshll.u32 %s331_s26, 5  ;;  %s330_s21 = scalar_lea.sflag [#allocation7], %s329_s24 }
  0xb6   : > { %s1852_s3 = scalar_lea.vmem [#allocation6], %s947_s16  ;;  %p2184_p12 = scmp.ne.s32.totalorder %s2157_s14, 0 }
  0xb8   : > { %1373 = dma.done.wait (%p2184_p12), %s330_s21, 512  }
  0xb9   : > { %1375 = vsyncadd (%p2184_p12), %s330_s21, 4294966784  ;;  %s340_s13 = sand.u32 1, %s1402_s19   ;;  %p2185_p9 = scmp.ne.s32.totalorder %s2158_s9, 0 }
  0xba   : > { %s948_s12 = sshll.u32 %s340_s13, 5 }
  0xbb   : > { %s1859_s28 = scalar_lea.vmem [#allocation8], %s948_s12 }
  0xbc   : > { %1377 = dma.done.wait (%p2185_p9), %s330_s21, 512  }
  0xbd   : > { %1379 = vsyncadd (%p2185_p9), %s330_s21, 4294966784  ;;  %p2186_p7 = scmp.eq.s32.totalorder %s1654_s15, 0 }
  0xbf   : > { %1381 = dma.done.wait (%p2186_p7), [#allocation5], 64   ;;  %p2187_p6 = pmov %p2186_p7 }
  0xc1   : > { %1383 = vsyncadd (%p2187_p6), [#allocation5], 4294967232  ;;  %p2188_p2 = pmov %p2187_p6 }
  0xc3   : > { %1385 = dma.done.wait (%p2188_p2), [#allocation11], 16   ;;  %p2189_p3 = pmov %p2188_p2 }
  0xc5   : > { %1387 = vsyncadd (%p2189_p3), [#allocation11], 4294967280 }
  0xc6   : > { %355 = sfence }
  0xc7   : > { %s2190_s14 = sld [smem:[#allocation22_spill]]  ;;  %v1876_v0 = vld [vmem:[%s1844_s29] sm:$0xff]  ;;  %v1880_v2 = vld [vmem:[%s1844_s29 + $0x8] sm:$0xff]  ;;  %v406_v6 = vld [vmem:[%s1852_s3 + $0x10] sm:$0xff]  ;;  %vm458_vm0 = vcmask 1040384   ;;  %s1460_s11 = smov 1  }
  0xc8   : > { %v404_v1 = vld [vmem:[%s1852_s3] sm:$0xff]  ;;  %v405_v3 = vld [vmem:[%s1852_s3 + $0x8] sm:$0xff]  ;;  %v438_v8 = vrot.slane %v1876_v0, 7  ;;  %v415_v9 = vld [vmem:[%s1859_s28 + $0x10] sm:$0xff]  ;;  %v439_v12 = vrot.slane %v1880_v2, 7  ;;  %vm499_vm1 = vcmask 7168  }
  0xc9   : > { %v413_v4 = vld [vmem:[%s1859_s28] sm:$0xff]  ;;  %v414_v5 = vld [vmem:[%s1859_s28 + $0x8] sm:$0xff]  ;;  %v1890_v19 = vld [vmem:[%s1844_s29 + $0x10] sm:$0xff]  ;;  %vm508_vm2 = vcmask 138240   ;;  %s1461_s7 = smov 127   ;;  %s1462_s8 = smov 126  }
  0xca   : > { %v407_v21 = vld [vmem:[%s1852_s3 + $0x18] sm:$0xff]  ;;  %v440_v28 = vrot.slane %v1890_v19, 7  ;;  %vm597_vm3 = vcmask 1046528   ;;  %vm618_vm4 = vcmask 1045504   ;;  %s1944_s17 = sld [smem:[#allocation9]]  ;;  %s1953_s24 = sld [smem:[#allocation9 + $0x1]] }
  0xcb   : > { %v416_v24 = vld [vmem:[%s1859_s28 + $0x18] sm:$0xff]  ;;  %s1946_s27 = sld [smem:[#allocation9 + $0x80]]  ;;  %s1956_s26 = sld [smem:[#allocation9 + $0x81]]  ;;  %vm672_vm5 = vcmask 130048  }
  0xcc   : > { %v1900_v33 = vld [vmem:[%s1844_s29 + $0x18] sm:$0xff]  ;;  %s1948_s5 = sld [smem:[#allocation9 + $0x100]]  ;;  %s1958_s16 = sld [smem:[#allocation9 + $0x101]] }
  0xcd   : > { %p398_p8 = scmp.gt.s32.totalorder %s2190_s14, 0  ;;  %p401_p1 = scmp.lt.s32.totalorder %s2190_s14, 1  ;;  %v441_v35 = vrot.slane %v1900_v33, 7 }
  0xce   : > { %s1950_s29 = sld [smem:[#allocation9 + $0x180]]  ;;  %s1961_s21 = sld [smem:[#allocation9 + $0x181]] }
  0xcf   : > { %s399_s9 = scalar_select %p398_p8, 1, 0 }
  0xd0   : > { %s402_s23 = scalar_select %p401_p1, 1, 0 }
  0xd1   : > { %s400_s4 = scvt.s32.f32 %s399_s9  ;;  %s1964_s3 = sld [smem:[#allocation9 + $0x2]] }
  0xd2   : > { %s403_s15 = scvt.s32.f32 %s402_s23  ;;  %s1966_s13 = sld [smem:[#allocation9 + $0x82]] }
  0xd3   : > { %v408_v7 = vstv %s400_s4  ;;  %s1968_s12 = sld [smem:[#allocation9 + $0x102]]  ;;  %s1974_s9 = sld [smem:[#allocation9 + $0x3]] }
  0xd4   : > { %v409_v10 = vmul.f32 %v408_v7, %v404_v1  ;;  %v410_v11 = vmul.f32 %v408_v7, %v405_v3  ;;  %v417_v13 = vstv %s403_s15  ;;  %v411_v16 = vmul.f32 %v408_v7, %v406_v6  ;;  %s1970_s28 = sld [smem:[#allocation9 + $0x182]]  ;;  %s1984_s23 = sld [smem:[#allocation9 + $0x83]] }
  0xd5   : > { %v418_v14 = vmul.f32 %v417_v13, %v413_v4  ;;  %v419_v15 = vmul.f32 %v417_v13, %v414_v5  ;;  %v420_v20 = vmul.f32 %v417_v13, %v415_v9  ;;  %v412_v29 = vmul.f32 %v408_v7, %v407_v21  ;;  %s1990_s4 = sld [smem:[#allocation9 + $0x103]] }
  0xd6   : > { %v426_v17 = vrot.slane %v409_v10, 7  ;;  %v427_v18 = vrot.slane %v410_v11, 7  ;;  %v428_v27 = vrot.slane %v411_v16, 7  ;;  %v421_v34 = vmul.f32 %v417_v13, %v416_v24  ;;  %s1992_s15 = sld [smem:[#allocation9 + $0x183]] }
  0xd7   : > { %v450_v22 = vrot.slane %v418_v14, 7  ;;  %v451_v23 = vrot.slane %v419_v15, 7  ;;  %v452_v32 = vrot.slane %v420_v20, 7  ;;  %v429_v38 = vrot.slane %v412_v29, 7 }
  0xd8   : > { %v459_v25 = vsel %vm458_vm0, %v426_v17, %v438_v8  ;;  %v460_v26 = vsel %vm458_vm0, %v427_v18, %v439_v12  ;;  %v461_v36 = vsel %vm458_vm0, %v428_v27, %v440_v28  ;;  %v453_v39 = vrot.slane %v421_v34, 7 }
  0xd9   : > { %475 = vrot.lane.b32.xlu0 %v459_v25, %s1460_s11  ;;  %479 = vrot.lane.b32.xlu1 %v460_v26, %s1460_s11  ;;  %v463_v30 = vsel %vm458_vm0, %v438_v8, %v450_v22  ;;  %v464_v31 = vsel %vm458_vm0, %v439_v12, %v451_v23  ;;  %v465_v37 = vsel %vm458_vm0, %v440_v28, %v452_v32 }
  0xda   : > { %v462_v40 = vsel %vm458_vm0, %v429_v38, %v441_v35  ;;  %v466_v41 = vsel %vm458_vm0, %v441_v35, %v453_v39 }
  0xdd   : > { %477 = vrot.lane.b32.xlu0 %v463_v30, %s1460_s11  ;;  %481 = vrot.lane.b32.xlu1 %v464_v31, %s1460_s11 }
  0xe1   : > { %483 = vrot.lane.b32.xlu0 %v461_v36, %s1460_s11  ;;  %485 = vrot.lane.b32.xlu1 %v465_v37, %s1460_s11 }
  0xe5   : > { %487 = vrot.lane.b32.xlu0 %v462_v40, %s1460_s11  ;;  %489 = vrot.lane.b32.xlu1 %v466_v41, %s1460_s11  ;;  %s2000_s11 = sld [smem:[#allocation10]] }
 0x14b   : > { %v476_v42 = vpop.permute.xlu0 %475  ;;  %v480_v43 = vpop.permute.xlu1 %479 }
 0x14c   : > { %v500_v44 = vsel %vm499_vm1, 0.0, %v476_v42  ;;  %v502_v45 = vsel %vm499_vm1, 0.0, %v480_v43 }
 0x14d   : > { %v509_v46 = vsel %vm508_vm2, %v500_v44, 0.0  ;;  %v511_v47 = vsel %vm508_vm2, %v502_v45, 0.0 }
 0x14e   : > { %525 = vrot.lane.b32.xlu0 %v509_v46, %s1461_s7 }
 0x14f   : > { %v478_v48 = vpop.permute.xlu0 %477  ;;  %v482_v49 = vpop.permute.xlu1 %481 }
 0x150   : > { %v501_v50 = vsel %vm499_vm1, 0.0, %v478_v48  ;;  %v503_v51 = vsel %vm499_vm1, 0.0, %v482_v49 }
 0x151   : > { %v510_v52 = vsel %vm508_vm2, %v501_v50, 0.0  ;;  %v512_v53 = vsel %vm508_vm2, %v503_v51, 0.0 }
 0x152   : > { %529 = vrot.lane.b32.xlu0 %v511_v47, %s1461_s7  ;;  %527 = vrot.lane.b32.xlu1 %v510_v52, %s1461_s7 }
 0x153   : > { %v484_v54 = vpop.permute.xlu0 %483  ;;  %v486_v55 = vpop.permute.xlu1 %485 }
 0x154   : > { %v504_v56 = vsel %vm499_vm1, 0.0, %v484_v54  ;;  %v505_v57 = vsel %vm499_vm1, 0.0, %v486_v55 }
 0x155   : > { %v513_v58 = vsel %vm508_vm2, %v504_v56, 0.0  ;;  %v1924_v59 = vsel %vm508_vm2, %v505_v57, 0.0  ;;  %v648_v56 = vstv %s1944_s17  ;;  %v675_v57 = vstv %s1946_s27  ;;  %s2007_s17 = sld [smem:[#allocation10 + $0x3]]  ;;  %s2191_s27 = sld [smem:[#allocation23_spill]] }
 0x156   : > { %531 = vrot.lane.b32.xlu1 %v512_v53, %s1461_s7  ;;  %533 = vrot.lane.b32.xlu0 %v513_v58, %s1461_s7 }
 0x157   : > { %v488_v60 = vpop.permute.xlu0 %487  ;;  %v490_v62 = vpop.permute.xlu1 %489 }
 0x158   : > { %v506_v61 = vsel %vm499_vm1, 0.0, %v488_v60  ;;  %v507_v1 = vsel %vm499_vm1, 0.0, %v490_v62 }
 0x159   : > { %v1930_v63 = vsel %vm508_vm2, %v506_v61, 0.0  ;;  %v1936_v3 = vsel %vm508_vm2, %v507_v1, 0.0  ;;  %v729_v61 = vstv %s1950_s29 }
 0x15a   : > { %535 = vrot.lane.b32.xlu1 %v1924_v59, %s1461_s7  ;;  %557 = vrot.lane.b32.xlu0 %v509_v46, %s1462_s8 }
 0x15e   : > { %559 = vrot.lane.b32.xlu1 %v510_v52, %s1462_s8  ;;  %561 = vrot.lane.b32.xlu0 %v511_v47, %s1462_s8 }
 0x162   : > { %563 = vrot.lane.b32.xlu1 %v512_v53, %s1462_s8  ;;  %537 = vrot.lane.b32.xlu0 %v1930_v63, %s1461_s7 }
 0x166   : > { %539 = vrot.lane.b32.xlu1 %v1936_v3, %s1461_s7  ;;  %565 = vrot.lane.b32.xlu0 %v513_v58, %s1462_s8  ;;  %s2002_s7 = sld [smem:[#allocation10 + $0x1]] }
 0x16a   : > { %567 = vrot.lane.b32.xlu1 %v1924_v59, %s1462_s8  ;;  %569 = vrot.lane.b32.xlu0 %v1930_v63, %s1462_s8 }
 0x16e   : > { %571 = vrot.lane.b32.xlu1 %v1936_v3, %s1462_s8  ;;  %s2005_s8 = sld [smem:[#allocation10 + $0x2]] }
 0x1c0   : > { %v526_v4 = vpop.permute.xlu0 %525 }
 0x1c1   : > { %v549_v11 = vadd.f32 %v526_v4, %v509_v46  ;;  %v678_v4 = vstv %s1956_s26  ;;  %s387_s26 = scalar_lea.vmem [#allocation12], %s946_s18  ;;  %s756_s18 = scalar_lea.sflag [#allocation4], %s1838_s0 }
 0x1c4   : > { %v528_v5 = vpop.permute.xlu1 %527  ;;  %v530_v6 = vpop.permute.xlu0 %529 }
 0x1c5   : > { %v550_v12 = vadd.f32 %v528_v5, %v510_v52  ;;  %v551_v16 = vadd.f32 %v530_v6, %v511_v47  ;;  %v705_v5 = vstv %s1958_s16  ;;  %s770_s16 = sshll.u32 %s387_s26, 4  ;;  %s2030_s16 = int_to_ptr.vmem [resolvable:$true] %s770_s16 }
 0x1c8   : > { %v532_v7 = vpop.permute.xlu1 %531  ;;  %v534_v8 = vpop.permute.xlu0 %533 }
 0x1c9   : > { %v552_v18 = vadd.f32 %v532_v7, %v512_v53  ;;  %v553_v36 = vadd.f32 %v534_v8, %v513_v58  ;;  %v702_v58 = vstv %s1948_s5  ;;  %v732_v8 = vstv %s1961_s21  ;;  %s978_s5 = sshll.u32 %s2191_s27, 3 }
 0x1ca   : > { %s767_s29 = sadd.s32 %s2190_s14, %s978_s5  ;;  %s1284_s14 = scalar_lea.vmem %s2030_s16, 512 }
 0x1cb   : > { %p1285_p10 = scmp.ne.s32.totalorder %s2030_s16, %s1284_s14 }
 0x1cc   : > { %v536_v9 = vpop.permute.xlu1 %535  ;;  %v558_v10 = vpop.permute.xlu0 %557 }
 0x1cd   : > { %v581_v13 = vadd.f32 %v558_v10, %v549_v11  ;;  %v554_v42 = vadd.f32 %v536_v9, %v1924_v59  ;;  %p1286_p11 = pnand %p1285_p10, %p1731_p4 }
 0x1cf   : > { %v598_v20 = vrot.slane %v581_v13, 1  ;;  %v619_v29 = vrot.slane %v581_v13, 2  ;;  %p1287_p5 = pneg %p1286_p11 }
 0x1d0   : > { %v560_v14 = vpop.permute.xlu1 %559  ;;  %v562_v15 = vpop.permute.xlu0 %561 }
 0x1d1   : > { %v582_v17 = vadd.f32 %v560_v14, %v550_v12  ;;  %v583_v22 = vadd.f32 %v562_v15, %v551_v16  ;;  %v655_v15 = vstv %s1964_s3  ;;  %v682_v16 = vstv %s1966_s13  ;;  %s2192_s13 = sld [smem:[#allocation34_spill]] }
 0x1d3   : > { %v599_v21 = vrot.slane %v582_v17, 1  ;;  %v620_v26 = vrot.slane %v582_v17, 2  ;;  %v601_v30 = vrot.slane %v583_v22, 1  ;;  %v622_v38 = vrot.slane %v583_v22, 2 }
 0x1d4   : > { %v564_v23 = vpop.permute.xlu1 %563  ;;  %v538_v24 = vpop.permute.xlu0 %537  ;;  %v709_v17 = vstv %s1968_s12 }
 0x1d5   : > { %v600_v25 = vsel %vm597_vm3, %v598_v20, %v599_v21  ;;  %v584_v27 = vadd.f32 %v564_v23, %v552_v18  ;;  %v621_v37 = vsel %vm618_vm4, %v619_v29, %v620_v26  ;;  %v555_v50 = vadd.f32 %v538_v24, %v1930_v63 }
 0x1d6   : > { %v614_v28 = vadd.f32 %v600_v25, %v581_v13  ;;  %v736_v18 = vstv %s1970_s28  ;;  %s1463_s28 = smov [#allocation12]  }
 0x1d7   : > { %v602_v31 = vrot.slane %v584_v27, 1  ;;  %v623_v32 = vrot.slane %v584_v27, 2 }
 0x1d8   : > { %v540_v34 = vpop.permute.xlu1 %539  ;;  %v566_v35 = vpop.permute.xlu0 %565  ;;  %v635_v40 = vadd.f32 %v621_v37, %v614_v28 }
 0x1d9   : > { %v603_v39 = vsel %vm597_vm3, %v601_v30, %v602_v31  ;;  %v624_v43 = vsel %vm618_vm4, %v622_v38, %v623_v32  ;;  %v585_v44 = vadd.f32 %v566_v35, %v553_v36  ;;  %v556_v51 = vadd.f32 %v540_v34, %v1936_v3 }
 0x1da   : > { %v615_v41 = vadd.f32 %v603_v39, %v583_v22  ;;  %v639_v49 = vmul.f32 0.11111111, %v635_v40  ;;  %v651_v3 = vstv %s1953_s24  ;;  %v659_v22 = vstv %s1974_s9  ;;  %s979_s24 = sshll.u32 %s767_s29, 7  ;;  %s1288_s9 = sshll.u32 %s1463_s28, 4  ;;  %s1289_s9 = int_to_ptr.vmem [resolvable:$false] %s1288_s9 }
 0x1db   : > { %v604_v53 = vrot.slane %v585_v44, 1  ;;  %v625_v62 = vrot.slane %v585_v44, 2  ;;  %s2027_s12 = scalar_lea.hbm %s2192_s13, %s979_s24  ;;  %p1291_p0 = scmp.lt.s32.totalorder %s2030_s16, %s1289_s9 }
 0x1dc   : > { %v636_v45 = vadd.f32 %v624_v43, %v615_v41  ;;  %v568_v46 = vpop.permute.xlu1 %567  ;;  %v570_v48 = vpop.permute.xlu0 %569  ;;  %v643_v7 = vsub.f32 %v1876_v0, %v639_v49  ;;  %v686_v41 = vstv %s1984_s23  ;;  %v740_v43 = vstv %s1992_s15  ;;  %s1290_s23 = scalar_lea.vmem %s1289_s9, 1024 }
 0x1dd   : > { %v586_v47 = vadd.f32 %v568_v46, %v554_v42  ;;  %v587_v59 = vadd.f32 %v570_v48, %v555_v50  ;;  %v713_v42 = vstv %s1990_s4  ;;  %p1292_p13 = scmp.lt.s32.totalorder %s1290_s23, %s1284_s14 }
 0x1de   : > { %v640_v52 = vmul.f32 0.11111111, %v636_v45  ;;  %v649_v24 = vmul.f32 %v648_v56, %v643_v7  ;;  %v676_v32 = vmul.f32 %v675_v57, %v643_v7  ;;  %v703_v34 = vmul.f32 %v702_v58, %v643_v7 }
 0x1df   : > { %v605_v54 = vrot.slane %v586_v47, 1  ;;  %v626_v55 = vrot.slane %v586_v47, 2  ;;  %v607_v12 = vrot.slane %v587_v59, 1  ;;  %v628_v21 = vrot.slane %v587_v59, 2  ;;  %p1293_p12 = por %p1292_p13, %p1291_p0 }
 0x1e0   : > { %v572_v60 = vpop.permute.xlu1 %571  ;;  %v644_v9 = vsub.f32 %v1880_v2, %v640_v52  ;;  %v730_v35 = vmul.f32 %v729_v61, %v643_v7  ;;  %v663_v58 = vstv %s2000_s11  ;;  %v744_v61 = vstv %s2007_s17 }
 0x1e1   : > { %v606_v63 = vsel %vm597_vm3, %v604_v53, %v605_v54  ;;  %v588_v1 = vadd.f32 %v572_v60, %v556_v51  ;;  %v627_v10 = vsel %vm618_vm4, %v625_v62, %v626_v55  ;;  %v717_v60 = vstv %s2005_s8  ;;  %p1294_p9 = pnand %p1293_p12, %p1287_p5 }
 0x1e2   : > { %v616_v6 = vadd.f32 %v606_v63, %v585_v44  ;;  %v652_v25 = vmul.f32 %v651_v3, %v644_v9  ;;  %v679_v26 = vmul.f32 %v678_v4, %v644_v9  ;;  %v706_v28 = vmul.f32 %v705_v5, %v644_v9 }
 0x1e3   : > { %v608_v13 = vrot.slane %v588_v1, 1  ;;  %v629_v14 = vrot.slane %v588_v1, 2  ;;  %v733_v29 = vmul.f32 %v732_v8, %v644_v9 }
 0x1e4   : > { %v637_v11 = vadd.f32 %v627_v10, %v616_v6  ;;  %v653_v45 = vadd.f32 %v652_v25, %v649_v24  ;;  %v680_v46 = vadd.f32 %v679_v26, %v676_v32  ;;  %v707_v47 = vadd.f32 %v706_v28, %v703_v34 }
 0x1e5   : > { %v609_v23 = vsel %vm597_vm3, %v607_v12, %v608_v13  ;;  %v630_v31 = vsel %vm618_vm4, %v628_v21, %v629_v14  ;;  %v734_v48 = vadd.f32 %v733_v29, %v730_v35 }
 0x1e6   : > { %v641_v20 = vmul.f32 0.11111111, %v637_v11  ;;  %v617_v27 = vadd.f32 %v609_v23, %v587_v59  ;;  %v690_v59 = vstv %s2002_s7 }
 0x1e8   : > { %v645_v30 = vsub.f32 %v1890_v19, %v641_v20  ;;  %v638_v36 = vadd.f32 %v630_v31, %v617_v27 }
 0x1ea   : > { %v656_v37 = vmul.f32 %v655_v15, %v645_v30  ;;  %v683_v38 = vmul.f32 %v682_v16, %v645_v30  ;;  %v710_v39 = vmul.f32 %v709_v17, %v645_v30  ;;  %v737_v40 = vmul.f32 %v736_v18, %v645_v30 }
 0x1eb   : > { %v642_v44 = vmul.f32 0.11111111, %v638_v36 }
 0x1ec   : > { %v657_v50 = vadd.f32 %v656_v37, %v653_v45  ;;  %v684_v51 = vadd.f32 %v683_v38, %v680_v46  ;;  %v711_v52 = vadd.f32 %v710_v39, %v707_v47  ;;  %v738_v53 = vadd.f32 %v737_v40, %v734_v48 }
 0x1ed   : > { %v646_v49 = vsub.f32 %v1900_v33, %v642_v44 }
 0x1ef   : > { %v660_v54 = vmul.f32 %v659_v22, %v646_v49  ;;  %v687_v55 = vmul.f32 %v686_v41, %v646_v49  ;;  %v714_v56 = vmul.f32 %v713_v42, %v646_v49  ;;  %v741_v57 = vmul.f32 %v740_v43, %v646_v49 }
 0x1f1   : > { %v661_v62 = vadd.f32 %v660_v54, %v657_v50  ;;  %v688_v63 = vadd.f32 %v687_v55, %v684_v51  ;;  %v715_v1 = vadd.f32 %v714_v56, %v711_v52  ;;  %v742_v3 = vadd.f32 %v741_v57, %v738_v53 }
 0x1f3   : > { %v664_v4 = vadd.f32 %v663_v58, %v661_v62  ;;  %v691_v5 = vadd.f32 %v690_v59, %v688_v63  ;;  %v718_v6 = vadd.f32 %v717_v60, %v715_v1  ;;  %v745_v7 = vadd.f32 %v744_v61, %v742_v3 }
 0x1f5   : > { %v955_v8 = vmul.f32 -1.442695, %v664_v4  ;;  %v961_v9 = vmul.f32 -1.442695, %v691_v5  ;;  %v968_v10 = vmul.f32 -1.442695, %v718_v6 }
 0x1f6   : > { %v975_v11 = vmul.f32 -1.442695, %v745_v7 }
 0x1f7   : > { %1148 = vpow2.f32 %v955_v8 }
 0x1f8   : > { %1150 = vpow2.f32 %v961_v9 }
 0x1f9   : > { %1152 = vpow2.f32 %v968_v10 }
 0x1fa   : > { %1154 = vpow2.f32 %v975_v11 }
 0x201   : > { %v1149_v12 = vpop.eup %1148 }
 0x202   : > { %v1151_v13 = vpop.eup %1150  ;;  %v668_v14 = vadd.f32 1.0, %v1149_v12 }
 0x203   : > { %v1153_v15 = vpop.eup %1152  ;;  %v695_v16 = vadd.f32 1.0, %v1151_v13 }
 0x204   : > { %v1155_v17 = vpop.eup %1154  ;;  %1156 = vrcp.f32 %v668_v14  ;;  %v722_v18 = vadd.f32 1.0, %v1153_v15 }
 0x205   : > { %1158 = vrcp.f32 %v695_v16  ;;  %v749_v20 = vadd.f32 1.0, %v1155_v17 }
 0x206   : > { %1160 = vrcp.f32 %v722_v18 }
 0x207   : > { %1162 = vrcp.f32 %v749_v20 }
 0x20e   : > { %v1157_v21 = vpop.eup %1156 }
 0x20f   : > { %v1159_v22 = vpop.eup %1158  ;;  %v671_v23 = vadd.f32 %v1157_v21, %v1876_v0 }
 0x210   : > { %v1161_v24 = vpop.eup %1160  ;;  %v698_v25 = vadd.f32 %v1159_v22, %v1880_v2 }
 0x211   : > { %v1163_v26 = vpop.eup %1162  ;;  %673 = vst.msk [vmem:[%s387_s26] sm:$0xff] %vm672_vm5, %v671_v23  ;;  %v725_v27 = vadd.f32 %v1161_v24, %v1890_v19 }
 0x212   : > { %962 = vst.msk [vmem:[%s387_s26 + $0x8] sm:$0xff] %vm672_vm5, %v698_v25  ;;  %v752_v0 = vadd.f32 %v1163_v26, %v1900_v33 }
 0x213   : > { %969 = vst.msk [vmem:[%s387_s26 + $0x10] sm:$0xff] %vm672_vm5, %v725_v27 }
 0x214   : > { %976 = vst.msk [vmem:[%s387_s26 + $0x18] sm:$0xff] %vm672_vm5, %v752_v0 }
 0x215   : > { %1297 = shalt.err (!%p1294_p9)
}
 0x216   : > { %s1298_s4 = scalar_lea.hbm %s2027_s12, 512  ;;  %s1302_s7 = scalar_lea.hbm %s2192_s13, 2048 }
 0x217   : > { %p1299_p7 = scmp.ne.s32.totalorder %s2027_s12, %s1298_s4  ;;  %p1303_p3 = scmp.lt.u32.totalorder %s2027_s12, %s2192_s13 }
 0x218   : > { %p1304_p8 = scmp.lt.u32.totalorder %s1302_s7, %s1298_s4  ;;  %p1306_p10 = scmp.lt.u32.totalorder %s1298_s4, %s2027_s12 }
 0x219   : > { %p1300_p6 = pnand %p1299_p7, %p1731_p4 }
 0x21a   : > { %p1305_p1 = por %p1304_p8, %p1303_p3 }
 0x21b   : > { %p1301_p2 = pneg %p1300_p6 }
 0x21c   : > { %p1307_p11 = por %p1306_p10, %p1305_p1 }
 0x21e   : > { %p1308_p5 = pnand %p1307_p11, %p1301_p2 }
 0x220   : > { %1311 = shalt.err (!%p1308_p5)
}
 0x221   : > { %s1464_s27 = smov 128   ;;  %s1465_s5 = smov 256  }
 0x222   : > { %s1466_s29 = smov 8  }
 0x223   : > { %996 = dma.vmem_to_hbm [thread:$0]  (%p1731_p4), %s2030_s16, 512, %s2027_s12, %s756_s18, %s1464_s27, %s1465_s5, %s1466_s29  }
 0x224 PF: > { %s2193_s24 = sld [smem:[#allocation20_spill]]  ;;  %s2194_s26 = sld [smem:[#allocation28_spill]] }
 0x225   : > { %p1024_p0 = scmp.ge.s32.totalorder %s1450_s6, 2 }
 0x22a   : > { %s785_s21 = sand.u32 1, %s2193_s24   ;;  %p2195_p13 = scmp.ne.s32.totalorder %s2194_s26, 0 }
 0x22b   : > { %s786_s3 = scalar_lea.sflag [#allocation4], %s785_s21 }
 0x22c   : > { %p1016_p12 = pnand %p1024_p0, %p2195_p13 }
 0x22e   : > { %1389 = dma.done.wait (!%p1016_p12), %s786_s3, 512  }
 0x22f   : > { %1391 = vsyncadd (!%p1016_p12), %s786_s3, 4294966784  ;;  %s26_s6 = sadd.s32 1, %s1450_s6   ;;  %s2197_s1 = sld [smem:[#allocation19_spill]] }
 0x230   : > { %p2062_p9 = scmp.ge.s32.totalorder %s26_s6, 6   ;;  %s2198_s23 = sld [smem:[#allocation27_spill]] }
 0x231   : > { %s2199_s0 = sld [smem:[#allocation21_spill]]  ;;  %s2200_s26 = sld [smem:[#allocation29_spill]] }
 0x232   : > { %s2201_s27 = sld [smem:[#allocation24_spill]]  ;;  %s2202_s29 = sld [smem:[#allocation25_spill]] }
 0x233   : > { %s2203_s16 = sld [smem:[#allocation26_spill]]  ;;  %s2204_s18 = smov %s1402_s19 }
 0x234   : > { %s2205_s19 = smov %s1406_s20  ;;  %s2206_s20 = smov %s1802_s10 }
 0x235   : > { %s2207_s21 = smov %s1414_s22  ;;  %s2208_s22 = smov %s2197_s1 }
 0x236   : > { %s2209_s24 = smov %s1426_s25  ;;  %s2211_s28 = smov %s1446_s30 }
 0x237   : > { %s2210_s25 = smov %s2199_s0  ;;  %25 = sbr.rel (!%p2062_p9) target bundleno = 20 (0x14), region = 121 }
 0x239   : > { %s2212_s30 = smov %s2203_s16 }
 0x23e   :  { %791 = vsyncpa [#allocation3], 1 }
 0x23f   :  { %793 = vsyncpa [#allocation3 + $0x1], 1 }
 0x240   :  { %794 = vsyncpa [#allocation7], 1 }
 0x241   :  { %796 = vsyncpa [#allocation7 + $0x1], 1 }
 0x242   :  { %797 = vsyncpa [#allocation4], 1 }
 0x243   :  { %799 = vsyncpa [#allocation4 + $0x1], 1 }
 0x244   :  { %800 = vsyncpa [#allocation5], 1 }
 0x245   :  { %802 = vsyncpa [#allocation5 + $0x1], 1 }
 0x246   :  { %803 = vsyncpa [#allocation11], 1 }

</bundles_post_ra>
